<compile_context>
chip_gen: v6e
topology: v6e:2x2x1
jax: 0.10.0
libtpu: 0.0.40
codegen_flags: <defaults>
</compile_context>

<pallas_src>
import functools

import jax
import jax.numpy as jnp
from jax.experimental import pallas as pl
from jax.experimental.pallas import tpu as pltpu

n_embd = 32
hidden = 4 * n_embd      # 128
dropout_p = 0.2          # TODO(synk): dropout is identity (eval mode); training-mode dropout
                         # would use pltpu.prng_seed + pltpu.prng_random_bits and a mask.
PACK = 4                 # tokens packed per row: 4 * 32 = 128 lanes (lane-dense I/O)


def ffn_kernel(x_ref, w1_ref, b1_ref, w2_ref, b2_ref, o_ref):
    # x_ref : (rows, PACK*C)   packed activations, float32 (cast to MXU dtype in-kernel)
    # w1_ref: (PACK*C, PACK*H) blockdiag(W1 x PACK), compute dtype (bf16)
    # b1_ref: (1, PACK*H)      tile(b1, PACK), float32
    # w2_ref: (PACK*H, PACK*C) blockdiag(W2 x PACK), compute dtype (bf16)
    # b2_ref: (1, PACK*C)      tile(b2, PACK), float32
    # o_ref : (rows, PACK*C)   packed outputs (float32 or bfloat16)
    x = x_ref[...].astype(w1_ref.dtype)            # f32 -> bf16 on the VPU (DMA-bound: free)
    h = jnp.dot(x, w1_ref[...], preferred_element_type=jnp.float32) + b1_ref[...]
    h = jnp.maximum(h, 0.0)                        # ReLU in f32
    y = jnp.dot(h.astype(w2_ref.dtype), w2_ref[...],
                preferred_element_type=jnp.float32) + b2_ref[...]
    o_ref[...] = y.astype(o_ref.dtype)


def _round_up(x, m):
    return pl.cdiv(x, m) * m


def pack_params(w1, b1, w2, b2, compute_dtype=jnp.bfloat16):
    """Build block-diagonal packed weights / tiled biases ONCE per parameter set.

    [t0|t1|t2|t3] @ blockdiag(W x4) = [t0@W | t1@W | t2@W | t3@W]  (exact).
    """
    C, H = w1.shape
    w1p = jax.scipy.linalg.block_diag(*([w1.astype(compute_dtype)] * PACK))  # (PACK*C, PACK*H)
    w2p = jax.scipy.linalg.block_diag(*([w2.astype(compute_dtype)] * PACK))  # (PACK*H, PACK*C)
    b1p = jnp.tile(b1.astype(jnp.float32), PACK).reshape(1, PACK * H)
    b2p = jnp.tile(b2.astype(jnp.float32), PACK).reshape(1, PACK * C)
    return w1p, b1p, w2p, b2p


@functools.partial(jax.jit, static_argnames=("tile_m", "out_dtype"))
def feed_forward(x, w1p, b1p, w2p, b2p, *, tile_m=8192, out_dtype=jnp.float32):
    """x: (B, T, C) float32.  Returns (B, T, C) in out_dtype."""
    B, T, C = x.shape
    assert PACK * C == w1p.shape[0], "packed weights do not match input channels"
    H = w1p.shape[1] // PACK
    M = B * T

    # Only PACK-alignment of M is required (no full-tile padding / output slicing).
    M_p = _round_up(M, PACK)
    x2d = x.reshape(M, C)
    if M_p != M:
        x2d = jnp.pad(x2d, ((0, M_p - M), (0, 0)))          # rare: at most PACK-1 rows
    rows_total = M_p // PACK
    xp = x2d.reshape(rows_total, PACK * C)                   # free reshape (contiguous)

    # Tile size: large enough to amortize the ~0.35us per-grid-step overhead; multiple of
    # 64 tokens so packed blocks are (16,128)-aligned for both f32 and bf16 blocks.
    tile_m = int(max(64, min(tile_m, 32768)))
    tile_m = (tile_m // 64) * 64
    rows = tile_m // PACK
    if rows >= rows_total:
        rows = rows_total                                    # single block == full array
    grid = (pl.cdiv(rows_total, rows),)

    out_isize = jnp.dtype(out_dtype).itemsize
    w_bytes = (w1p.size * w1p.dtype.itemsize + w2p.size * w2p.dtype.itemsize
               + b1p.size * b1p.dtype.itemsize + b2p.size * b2p.dtype.itemsize)
    # Double-buffered in/out blocks + resident weights + margin; cap at 40 MiB for v7x.
    vmem_limit = 2 * rows * PACK * C * (4 + out_isize) + w_bytes + (2 << 20)
    vmem_limit = int(min(max(vmem_limit, 16 << 20), 40 << 20))

    flops = 4 * PACK * C * H * M_p                           # MXU MACs incl. block-diag zeros
    bytes_accessed = M_p * C * 4 + M_p * C * out_isize + w_bytes

    outp = pl.pallas_call(
        ffn_kernel,
        out_shape=jax.ShapeDtypeStruct((rows_total, PACK * C), out_dtype),
        grid_spec=pl.GridSpec(
            grid=grid,
            in_specs=[
                pl.BlockSpec((rows, PACK * C), lambda i: (i, 0)),       # activations (f32)
                pl.BlockSpec((PACK * C, PACK * H), lambda i: (0, 0)),   # W1 (VMEM-resident)
                pl.BlockSpec((1, PACK * H), lambda i: (0, 0)),          # b1 (resident)
                pl.BlockSpec((PACK * H, PACK * C), lambda i: (0, 0)),   # W2 (resident)
                pl.BlockSpec((1, PACK * C), lambda i: (0, 0)),          # b2 (resident)
            ],
            out_specs=pl.BlockSpec((rows, PACK * C), lambda i: (i, 0)),
        ),
        compiler_params=pltpu.CompilerParams(
            dimension_semantics=("parallel",),   # independent M tiles
            vmem_limit_bytes=vmem_limit,
        ),
        cost_estimate=pl.CostEstimate(
            flops=flops, transcendentals=0, bytes_accessed=bytes_accessed),
    )(xp, w1p, b1p, w2p, b2p)

    out = outp.reshape(M_p, C)
    if M_p != M:
        out = out[:M]
    return out.reshape(B, T, C)


def init_params(key):
    """Deterministic init matching nn.Linear's U(-1/sqrt(fan_in), 1/sqrt(fan_in))."""
    k1, k2, k3, k4 = jax.random.split(key, 4)
    bound1 = 1.0 / jnp.sqrt(jnp.float32(n_embd))
    bound2 = 1.0 / jnp.sqrt(jnp.float32(hidden))
    # weights stored transposed to (in, out) so the kernel does x @ W
    w1 = jax.random.uniform(k1, (n_embd, hidden), jnp.float32, -bound1, bound1)
    b1 = jax.random.uniform(k2, (hidden,), jnp.float32, -bound1, bound1)
    w2 = jax.random.uniform(k3, (hidden, n_embd), jnp.float32, -bound2, bound2)
    b2 = jax.random.uniform(k4, (n_embd,), jnp.float32, -bound2, bound2)
    return w1, b1, w2, b2


def _mixed_precision_ref(x, w1, b1, w2, b2):
    """Mirrors the kernel's recipe: bf16 matmul operands, f32 accumulation/bias/ReLU."""
    xb = x.reshape(-1, n_embd).astype(jnp.bfloat16).astype(jnp.float32)
    w1b = w1.astype(jnp.bfloat16).astype(jnp.float32)
    w2b = w2.astype(jnp.bfloat16).astype(jnp.float32)
    h = jnp.maximum(xb @ w1b + b1, 0.0).astype(jnp.bfloat16).astype(jnp.float32)
    return (h @ w2b + b2).reshape(x.shape)


if __name__ == "__main__":
    key = jax.random.PRNGKey(0)
    k_x, k_p, k_x2 = jax.random.split(key, 3)

    w1, b1, w2, b2 = init_params(k_p)
    packed = pack_params(w1, b1, w2, b2)     # hoisted: built once per parameter set

    # --- primary check: small module-consistent shapes, f32 output (default) ---
    B, T = 2, 8
    x = jax.random.normal(k_x, (B, T, n_embd), jnp.float32)
    y = jax.block_until_ready(feed_forward(x, *packed))
    assert y.shape == (B, T, n_embd) and y.dtype == jnp.float32

    ref_mp = _mixed_precision_ref(x, w1, b1, w2, b2)
    assert jnp.allclose(y, ref_mp, atol=1e-4, rtol=1e-4), float(jnp.max(jnp.abs(y - ref_mp)))

    ref_f32 = (jnp.maximum(x.reshape(-1, n_embd) @ w1 + b1, 0.0) @ w2 + b2).reshape(B, T, n_embd)
    assert jnp.allclose(y, ref_f32, atol=5e-2, rtol=5e-2), float(jnp.max(jnp.abs(y - ref_f32)))

    # --- secondary check: multi-step grid with a ragged last block + bf16 output flag ---
    B2, T2 = 4, 100                          # 100 packed rows; tile_m=64 -> 16-row blocks, grid=7
    x2 = jax.random.normal(k_x2, (B2, T2, n_embd), jnp.float32)
    y2 = jax.block_until_ready(
        feed_forward(x2, *packed, tile_m=64, out_dtype=jnp.bfloat16))
    assert y2.shape == (B2, T2, n_embd) and y2.dtype == jnp.bfloat16
    ref2 = _mixed_precision_ref(x2, w1, b1, w2, b2)
    assert jnp.allclose(y2.astype(jnp.float32), ref2, atol=5e-2, rtol=5e-2), \
        float(jnp.max(jnp.abs(y2.astype(jnp.float32) - ref2)))

    print("KERNEL_OK")
</pallas_src>

<mosaic_0001>
module attributes {stable_mosaic.version = 11 : i64} {
  func.func @ffn_kernel(%arg0: i32, %arg1: memref<4x128xf32, #tpu.memory_space<vmem>>, %arg2: memref<128x512xbf16, #tpu.memory_space<vmem>>, %arg3: memref<1x512xf32, #tpu.memory_space<vmem>>, %arg4: memref<512x128xbf16, #tpu.memory_space<vmem>>, %arg5: memref<1x128xf32, #tpu.memory_space<vmem>>, %arg6: memref<4x128xf32, #tpu.memory_space<vmem>>) attributes {dimension_semantics = [#tpu.dimension_semantics<parallel>], iteration_bounds = array<i64: 1>, scalar_prefetch = 0 : i64, scratch_operands = 0 : i64, tpu.core_type = #tpu.core_type<tc>, window_params = [{transform_indices = @transform_0, window_bounds = array<i64: 4, 128>}, {pipeline_mode = #tpu.pipeline_mode<synchronous>, transform_indices = @transform_1, window_bounds = array<i64: 128, 512>}, {pipeline_mode = #tpu.pipeline_mode<synchronous>, transform_indices = @transform_2, window_bounds = array<i64: 1, 512>}, {pipeline_mode = #tpu.pipeline_mode<synchronous>, transform_indices = @transform_3, window_bounds = array<i64: 512, 128>}, {pipeline_mode = #tpu.pipeline_mode<synchronous>, transform_indices = @transform_4, window_bounds = array<i64: 1, 128>}, {transform_indices = @transform_5, window_bounds = array<i64: 4, 128>}]} {
    %c0 = arith.constant 0 : index
    %c0_0 = arith.constant 0 : index
    %0 = vector.load %arg1[%c0, %c0_0] : memref<4x128xf32, #tpu.memory_space<vmem>>, vector<4x128xf32>
    %1 = arith.truncf %0 : vector<4x128xf32> to vector<4x128xbf16>
    %c0_1 = arith.constant 0 : index
    %c0_2 = arith.constant 0 : index
    %2 = vector.load %arg2[%c0_1, %c0_2] : memref<128x512xbf16, #tpu.memory_space<vmem>>, vector<128x512xbf16>
    %cst = arith.constant dense<0.000000e+00> : vector<4x512xf32>
    %3 = tpu.matmul %1, %2, %cst {dimension_numbers = #tpu.dot_dimension_numbers<[1], [0], [0], [1], [0, 0, 1, 1], [], []>} : vector<4x128xbf16>, vector<128x512xbf16>, vector<4x512xf32> -> vector<4x512xf32>
    %c0_3 = arith.constant 0 : index
    %c0_4 = arith.constant 0 : index
    %4 = vector.load %arg3[%c0_3, %c0_4] : memref<1x512xf32, #tpu.memory_space<vmem>>, vector<1x512xf32>
    %5 = vector.broadcast %4 : vector<1x512xf32> to vector<4x512xf32>
    %6 = arith.addf %3, %5 : vector<4x512xf32>
    %cst_5 = arith.constant 0.000000e+00 : f32
    %7 = vector.broadcast %cst_5 : f32 to vector<4x512xf32>
    %8 = arith.maximumf %6, %7 : vector<4x512xf32>
    %9 = arith.truncf %8 : vector<4x512xf32> to vector<4x512xbf16>
    %c0_6 = arith.constant 0 : index
    %c0_7 = arith.constant 0 : index
    %10 = vector.load %arg4[%c0_6, %c0_7] : memref<512x128xbf16, #tpu.memory_space<vmem>>, vector<512x128xbf16>
    %cst_8 = arith.constant dense<0.000000e+00> : vector<4x128xf32>
    %11 = tpu.matmul %9, %10, %cst_8 {dimension_numbers = #tpu.dot_dimension_numbers<[1], [0], [0], [1], [0, 0, 1, 1], [], []>} : vector<4x512xbf16>, vector<512x128xbf16>, vector<4x128xf32> -> vector<4x128xf32>
    %c0_9 = arith.constant 0 : index
    %c0_10 = arith.constant 0 : index
    %12 = vector.load %arg5[%c0_9, %c0_10] : memref<1x128xf32, #tpu.memory_space<vmem>>, vector<1x128xf32>
    %13 = vector.broadcast %12 : vector<1x128xf32> to vector<4x128xf32>
    %14 = arith.addf %11, %13 : vector<4x128xf32>
    %c0_11 = arith.constant 0 : index
    %c0_12 = arith.constant 0 : index
    %15 = vector.load %arg6[%c0_11, %c0_12] : memref<4x128xf32, #tpu.memory_space<vmem>>, vector<4x128xf32>
    tpu.vector_store %arg6[%c0_11, %c0_12], %14 {strides = array<i32>} : memref<4x128xf32, #tpu.memory_space<vmem>>, vector<4x128xf32>,
    return
  }
  func.func @transform_0(%arg0: i32) -> (i32, i32) {
    %c0_i32 = arith.constant 0 : i32
    %c0_i32_0 = arith.constant 0 : i32
    return %arg0, %c0_i32 : i32, i32
  }
  func.func @transform_1(%arg0: i32) -> (i32, i32) {
    %c0_i32 = arith.constant 0 : i32
    %c0_i32_0 = arith.constant 0 : i32
    %c0_i32_1 = arith.constant 0 : i32
    return %c0_i32, %c0_i32_0 : i32, i32
  }
  func.func @transform_2(%arg0: i32) -> (i32, i32) {
    %c0_i32 = arith.constant 0 : i32
    %c0_i32_0 = arith.constant 0 : i32
    %c0_i32_1 = arith.constant 0 : i32
    return %c0_i32, %c0_i32_0 : i32, i32
  }
  func.func @transform_3(%arg0: i32) -> (i32, i32) {
    %c0_i32 = arith.constant 0 : i32
    %c0_i32_0 = arith.constant 0 : i32
    %c0_i32_1 = arith.constant 0 : i32
    return %c0_i32, %c0_i32_0 : i32, i32
  }
  func.func @transform_4(%arg0: i32) -> (i32, i32) {
    %c0_i32 = arith.constant 0 : i32
    %c0_i32_0 = arith.constant 0 : i32
    %c0_i32_1 = arith.constant 0 : i32
    return %c0_i32, %c0_i32_0 : i32, i32
  }
  func.func @transform_5(%arg0: i32) -> (i32, i32) {
    %c0_i32 = arith.constant 0 : i32
    %c0_i32_0 = arith.constant 0 : i32
    return %arg0, %c0_i32 : i32, i32
  }
}

</mosaic_0001>

<bundles_post_ra>
// kernel: feed_forward.1
= control target key start
LH: loop header
LB: loop body
LE: loop exit
PB: predicated region body
PF: predicated region fallthrough
CT: control target
= control target key end

     0   :  { %10 = vsyncpa [#allocation3], 0  ;;  %s1000_s0 = inlined_call_operand.vmem [shape: f32[4,128], index: 0, kind: input, shape index: {}]   ;;  %s1001_s1 = inlined_call_operand.hbm [shape: bf16[128,512], index: 1, kind: input, shape index: {}]   ;;  %s1002_s2 = inlined_call_operand.vmem [shape: f32[1,512], index: 2, kind: input, shape index: {}]   ;;  %s1003_s3 = inlined_call_operand.hbm [shape: bf16[512,128], index: 3, kind: input, shape index: {}]   ;;  %s1004_s4 = inlined_call_operand.vmem [shape: f32[1,128], index: 4, kind: input, shape index: {}]   ;;  %s1005_s5 = inlined_call_operand.vmem [shape: f32[4,128], index: 5, kind: output, shape index: {}]  }
   0x1   :  { %11 = vsyncpa [#allocation5], 0  ;;  %s945_s18 = smov [#allocation2]  }
   0x2   :  { %s19_s19 = sshll.u32 %s945_s18, 4  ;;  %s20_s19 = int_to_ptr.vmem [resolvable:$true] %s19_s19 }
   0x3   :  { %s909_s20 = scalar_lea.vmem %s20_s19, 4096  ;;  %p914_p1 = scmp.lt.s32.totalorder %s20_s19, %s20_s19 }
   0x4   :  { %p910_p0 = scmp.ne.s32.totalorder %s20_s19, %s909_s20  ;;  %p915_p2 = scmp.lt.s32.totalorder %s909_s20, %s909_s20 }
   0x6   :  { %p916_p3 = por %p915_p2, %p914_p1 }
   0x8   :  { %p917_p4 = pnand %p916_p3, %p910_p0 }
   0xa   :  { %920 = shalt.err (!%p917_p4)
}
   0xb   :  { %s946_s21 = smov 256   ;;  %s947_s22 = smov 16  }
   0xc   :  { %25 = dma.hbm_to_vmem [thread:$0]  %s1001_s1, 4096, %s20_s19, [#allocation3], %s946_s21, %s946_s21, %s947_s22  }
   0xd   :  { %s948_s25 = smov [#allocation4]  }
   0xe   :  { %s33_s26 = sshll.u32 %s948_s25, 4  ;;  %s34_s26 = int_to_ptr.vmem [resolvable:$true] %s33_s26 }
   0xf   :  { %s929_s27 = scalar_lea.vmem %s34_s26, 4096  ;;  %p934_p6 = scmp.lt.s32.totalorder %s34_s26, %s34_s26 }
  0x10   :  { %p930_p5 = scmp.ne.s32.totalorder %s34_s26, %s929_s27  ;;  %p935_p7 = scmp.lt.s32.totalorder %s929_s27, %s929_s27 }
  0x12   :  { %p936_p8 = por %p935_p7, %p934_p6 }
  0x14   :  { %p937_p9 = pnand %p936_p8, %p930_p5 }
  0x16   :  { %940 = shalt.err (!%p937_p9)
}
  0x17   :  { %s949_s28 = smov 64   ;;  %s950_s29 = smov 4  }
  0x18   :  { %39 = dma.hbm_to_vmem [thread:$0]  %s1003_s3, 4096, %s34_s26, [#allocation5], %s949_s28, %s949_s28, %s950_s29  }
  0x19   :  { %941 = dma.done.wait [#allocation3], 4096  }
  0x1a   :  { %942 = vsyncadd [#allocation3], 4294963200 }
  0x1b   :  { %943 = dma.done.wait [#allocation5], 4096  }
  0x1c   :  { %944 = vsyncadd [#allocation5], 4294963200  ;;  %v951_v0 = vmov 0   ;;  %v821_v1 = vld [vmem:[#allocation2 + $0xe4] ss:$16 sps:$4 sm:$0xff]   ;;  %v869_v34 = vld [vmem:[#allocation4 + $0x78] sm:$0xff]  }
  0x1d   :  { %297 = vmatprep.mubr.bf16.mxu0 %v951_v0  ;;  %338 = vmatprep.mubr.bf16.mxu1 %v951_v0  ;;  %v823_v2 = vld [vmem:[#allocation2 + $0xec] ss:$16 sps:$4 sm:$0xff]   ;;  %v825_v3 = vld [vmem:[#allocation2 + $0xe0] ss:$16 sps:$4 sm:$0xff]   ;;  %v826_v4 = vld [vmem:[#allocation2 + $0xe8] ss:$16 sps:$4 sm:$0xff]  }
  0x1e   :  { %265 = vmatprep.subr.bf16.mxu0 %v821_v1  ;;  %306 = vmatprep.subr.bf16.mxu1 %v823_v2  ;;  %v827_v5 = vld [vmem:[#allocation2 + $0xc4] ss:$16 sps:$4 sm:$0xff]   ;;  %v829_v6 = vld [vmem:[#allocation2 + $0xcc] ss:$16 sps:$4 sm:$0xff]   ;;  %v831_v7 = vld [vmem:[#allocation2 + $0xc0] ss:$16 sps:$4 sm:$0xff]  }
  0x1f   :  { %266 = vmatpush1.bf16.msra.mxu0 %v825_v3  ;;  %307 = vmatpush1.bf16.msra.mxu1 %v826_v4  ;;  %v832_v8 = vld [vmem:[#allocation2 + $0xc8] ss:$16 sps:$4 sm:$0xff]   ;;  %v833_v9 = vld [vmem:[#allocation2 + $0xa4] ss:$16 sps:$4 sm:$0xff]   ;;  %v835_v10 = vld [vmem:[#allocation2 + $0xac] ss:$16 sps:$4 sm:$0xff]   ;;  %v85_v3 = vlaneseq }
  0x20   :  { %267 = vmatprep.subr.bf16.mxu0 %v827_v5  ;;  %308 = vmatprep.subr.bf16.mxu1 %v829_v6  ;;  %v837_v11 = vld [vmem:[#allocation2 + $0xa0] ss:$16 sps:$4 sm:$0xff]   ;;  %v838_v12 = vld [vmem:[#allocation2 + $0xa8] ss:$16 sps:$4 sm:$0xff]   ;;  %v839_v13 = vld [vmem:[#allocation2 + $0x84] ss:$16 sps:$4 sm:$0xff]  }
  0x21   :  { %v841_v14 = vld [vmem:[#allocation2 + $0x8c] ss:$16 sps:$4 sm:$0xff]   ;;  %v843_v15 = vld [vmem:[#allocation2 + $0x80] ss:$16 sps:$4 sm:$0xff]   ;;  %v844_v16 = vld [vmem:[#allocation2 + $0x88] ss:$16 sps:$4 sm:$0xff]  }
  0x22   :  { %v845_v17 = vld [vmem:[#allocation2 + $0x64] ss:$16 sps:$4 sm:$0xff]   ;;  %v847_v18 = vld [vmem:[#allocation2 + $0x6c] ss:$16 sps:$4 sm:$0xff]   ;;  %v849_v19 = vld [vmem:[#allocation2 + $0x60] ss:$16 sps:$4 sm:$0xff]  }
  0x23   :  { %268 = vmatpush1.bf16.msra.mxu0 %v831_v7  ;;  %309 = vmatpush1.bf16.msra.mxu1 %v832_v8  ;;  %v850_v20 = vld [vmem:[#allocation2 + $0x68] ss:$16 sps:$4 sm:$0xff]   ;;  %v851_v21 = vld [vmem:[#allocation2 + $0x44] ss:$16 sps:$4 sm:$0xff]   ;;  %v853_v22 = vld [vmem:[#allocation2 + $0x4c] ss:$16 sps:$4 sm:$0xff]  }
  0x24   :  { %269 = vmatprep.subr.bf16.mxu0 %v833_v9  ;;  %310 = vmatprep.subr.bf16.mxu1 %v835_v10  ;;  %v855_v23 = vld [vmem:[#allocation2 + $0x40] ss:$16 sps:$4 sm:$0xff]   ;;  %v856_v24 = vld [vmem:[#allocation2 + $0x48] ss:$16 sps:$4 sm:$0xff]   ;;  %v857_v25 = vld [vmem:[#allocation2 + $0x24] ss:$16 sps:$4 sm:$0xff]  }
  0x25   :  { %v859_v26 = vld [vmem:[#allocation2 + $0x2c] ss:$16 sps:$4 sm:$0xff]   ;;  %v861_v27 = vld [vmem:[#allocation2 + $0x20] ss:$16 sps:$4 sm:$0xff]   ;;  %v862_v28 = vld [vmem:[#allocation2 + $0x28] ss:$16 sps:$4 sm:$0xff]  }
  0x26   :  { %v863_v29 = vld [vmem:[#allocation2 + $0x4] ss:$16 sps:$4 sm:$0xff]   ;;  %v865_v30 = vld [vmem:[#allocation2 + $0xc] ss:$16 sps:$4 sm:$0xff]   ;;  %v867_v31 = vld [vmem:[#allocation2] ss:$16 sps:$4 sm:$0xff]  }
  0x27   :  { %270 = vmatpush1.bf16.msra.mxu0 %v837_v11  ;;  %311 = vmatpush1.bf16.msra.mxu1 %v838_v12  ;;  %v868_v32 = vld [vmem:[#allocation2 + $0x8] ss:$16 sps:$4 sm:$0xff]   ;;  %v49_v33 = vld [vmem:[%s1000_s0] sm:$0xf]  ;;  %v873_v39 = vld [vmem:[#allocation4 + $0x70] sm:$0xff]   ;;  %v86_v4 = vshrl.u32 %v85_v3, 7 }
  0x28   :  { %271 = vmatprep.subr.bf16.mxu0 %v839_v13  ;;  %312 = vmatprep.subr.bf16.mxu1 %v841_v14  ;;  %v870_v35 = vld [vmem:[#allocation4 + $0xf8] sm:$0xff]   ;;  %v50_v37 = vpack.c.bf16 %v49_v33, %v49_v33  ;;  %v874_v40 = vld [vmem:[#allocation4 + $0xf0] sm:$0xff]   ;;  %v877_v43 = vld [vmem:[#allocation4 + $0x68] sm:$0xff]  }
  0x29   :  { %v871_v36 = vld [vmem:[#allocation4 + $0x38] sm:$0xff]   ;;  %v875_v41 = vld [vmem:[#allocation4 + $0x30] sm:$0xff]   ;;  %v878_v44 = vld [vmem:[#allocation4 + $0xe8] sm:$0xff]   ;;  %v87_v5 = vsub.s32 0, %v86_v4  ;;  %v95_v6 = vsub.s32 2, %v86_v4  ;;  %v91_v8 = vsub.s32 1, %v86_v4 }
  0x2a   :  { %v872_v38 = vld [vmem:[#allocation4 + $0xb8] sm:$0xff]   ;;  %v876_v42 = vld [vmem:[#allocation4 + $0xb0] sm:$0xff]   ;;  %v879_v45 = vld [vmem:[#allocation4 + $0x28] sm:$0xff]   ;;  %v99_v9 = vsub.s32 3, %v86_v4 }
  0x2b   :  { %272 = vmatpush1.bf16.msra.mxu0 %v843_v15  ;;  %313 = vmatpush1.bf16.msra.mxu1 %v844_v16  ;;  %v880_v46 = vld [vmem:[#allocation4 + $0xa8] sm:$0xff]   ;;  %v881_v47 = vld [vmem:[#allocation4 + $0x60] sm:$0xff]   ;;  %v885_v51 = vld [vmem:[#allocation4 + $0x58] sm:$0xff]  }
  0x2c   :  { %273 = vmatprep.subr.bf16.mxu0 %v845_v17  ;;  %314 = vmatprep.subr.bf16.mxu1 %v847_v18  ;;  %v882_v48 = vld [vmem:[#allocation4 + $0xe0] sm:$0xff]   ;;  %v886_v52 = vld [vmem:[#allocation4 + $0xd8] sm:$0xff]   ;;  %v889_v55 = vld [vmem:[#allocation4 + $0x50] sm:$0xff]  }
  0x2d   :  { %v883_v49 = vld [vmem:[#allocation4 + $0x20] sm:$0xff]   ;;  %v887_v53 = vld [vmem:[#allocation4 + $0x18] sm:$0xff]   ;;  %v890_v56 = vld [vmem:[#allocation4 + $0xd0] sm:$0xff]  }
  0x2e   :  { %v884_v50 = vld [vmem:[#allocation4 + $0xa0] sm:$0xff]   ;;  %v888_v54 = vld [vmem:[#allocation4 + $0x98] sm:$0xff]   ;;  %v891_v57 = vld [vmem:[#allocation4 + $0x10] sm:$0xff]  }
  0x2f   :  { %274 = vmatpush1.bf16.msra.mxu0 %v849_v19  ;;  %315 = vmatpush1.bf16.msra.mxu1 %v850_v20  ;;  %v892_v58 = vld [vmem:[#allocation4 + $0x90] sm:$0xff]   ;;  %v893_v59 = vld [vmem:[#allocation4 + $0x48] sm:$0xff]   ;;  %v897_v63 = vld [vmem:[#allocation4 + $0x40] sm:$0xff]  }
  0x30   :  { %275 = vmatprep.subr.bf16.mxu0 %v851_v21  ;;  %316 = vmatprep.subr.bf16.mxu1 %v853_v22  ;;  %v894_v60 = vld [vmem:[#allocation4 + $0xc8] sm:$0xff]   ;;  %v898_v0 = vld [vmem:[#allocation4 + $0xc0] sm:$0xff]  }
  0x31   :  { %v895_v61 = vld [vmem:[#allocation4 + $0x8] sm:$0xff]   ;;  %v899_v1 = vld [vmem:[#allocation4] sm:$0xff]  }
  0x32   :  { %v896_v62 = vld [vmem:[#allocation4 + $0x88] sm:$0xff]   ;;  %v900_v2 = vld [vmem:[#allocation4 + $0x80] sm:$0xff]  }
  0x33   :  { %276 = vmatpush1.bf16.msra.mxu0 %v855_v23  ;;  %317 = vmatpush1.bf16.msra.mxu1 %v856_v24  ;;  %v83_v7 = vld [vmem:[%s1002_s2] sm:$0xf] }
  0x34   :  { %277 = vmatprep.subr.bf16.mxu0 %v857_v25  ;;  %318 = vmatprep.subr.bf16.mxu1 %v859_v26  ;;  %v88_v10 = vrot.slane %v83_v7, %v87_v5  ;;  %v96_v11 = vrot.slane %v83_v7, %v95_v6  ;;  %v92_v12 = vrot.slane %v83_v7, %v91_v8 }
  0x35   :  { %v100_v13 = vrot.slane %v83_v7, %v99_v9 }
  0x37   :  { %278 = vmatpush1.bf16.msra.mxu0 %v861_v27  ;;  %319 = vmatpush1.bf16.msra.mxu1 %v862_v28 }
  0x38   :  { %279 = vmatprep.subr.bf16.mxu0 %v863_v29  ;;  %320 = vmatprep.subr.bf16.mxu1 %v865_v30 }
  0x3b   :  { %280 = vmatpush1.bf16.msra.mxu0 %v867_v31  ;;  %321 = vmatpush1.bf16.msra.mxu1 %v868_v32 }
  0x3c   :  { %770 = vmatprep.subr.bf16.mxu0 %v869_v34  ;;  %792 = vmatprep.subr.bf16.mxu1 %v870_v35 }
  0x3e   :  { %298 = vmatmul.mubr.bf16.vlgmr.msra.gmra.mxu0 %v50_v37  ;;  %339 = vmatmul.mubr.bf16.vlgmr.msra.gmra.mxu1 %v50_v37 }
  0x3f   :  { %771 = vmatpush3.bf16.msra.mxu0 %v871_v36  ;;  %793 = vmatpush3.bf16.msra.mxu1 %v872_v38  ;;  %v737_v36 = vld [vmem:[%s1004_s4] ss:$0 sm:$0xff] }
  0x40   :  { %772 = vmatprep.subr.bf16.mxu0 %v873_v39  ;;  %794 = vmatprep.subr.bf16.mxu1 %v874_v40 }
  0x43   :  { %773 = vmatpush3.bf16.msra.mxu0 %v875_v41  ;;  %795 = vmatpush3.bf16.msra.mxu1 %v876_v42 }
  0x44   :  { %774 = vmatprep.subr.bf16.mxu0 %v877_v43  ;;  %796 = vmatprep.subr.bf16.mxu1 %v878_v44 }
  0x47   :  { %775 = vmatpush3.bf16.msra.mxu0 %v879_v45  ;;  %797 = vmatpush3.bf16.msra.mxu1 %v880_v46 }
  0x48   :  { %776 = vmatprep.subr.bf16.mxu0 %v881_v47  ;;  %798 = vmatprep.subr.bf16.mxu1 %v882_v48 }
  0x4b   :  { %777 = vmatpush3.bf16.msra.mxu0 %v883_v49  ;;  %799 = vmatpush3.bf16.msra.mxu1 %v884_v50 }
  0x4c   :  { %778 = vmatprep.subr.bf16.mxu0 %v885_v51  ;;  %800 = vmatprep.subr.bf16.mxu1 %v886_v52 }
  0x4f   :  { %779 = vmatpush3.bf16.msra.mxu0 %v887_v53  ;;  %801 = vmatpush3.bf16.msra.mxu1 %v888_v54 }
  0x50   :  { %780 = vmatprep.subr.bf16.mxu0 %v889_v55  ;;  %802 = vmatprep.subr.bf16.mxu1 %v890_v56 }
  0x53   :  { %781 = vmatpush3.bf16.msra.mxu0 %v891_v57  ;;  %803 = vmatpush3.bf16.msra.mxu1 %v892_v58 }
  0x54   :  { %782 = vmatprep.subr.bf16.mxu0 %v893_v59  ;;  %804 = vmatprep.subr.bf16.mxu1 %v894_v60 }
  0x57   :  { %783 = vmatpush3.bf16.msra.mxu0 %v895_v61  ;;  %805 = vmatpush3.bf16.msra.mxu1 %v896_v62 }
  0x58   :  { %784 = vmatprep.subr.bf16.mxu0 %v897_v63  ;;  %806 = vmatprep.subr.bf16.mxu1 %v898_v0 }
  0x5b   :  { %785 = vmatpush3.bf16.msra.mxu0 %v899_v1  ;;  %807 = vmatpush3.bf16.msra.mxu1 %v900_v2 }
  0xfe   :  { %v299_v14 = vpop.f32.mrf.mxu0  ;;  %v340_v15 = vpop.f32.mrf.mxu1 }
  0xff   :  { %v300_v16 = vadd.f32 %v299_v14, %v88_v10  ;;  %v341_v17 = vadd.f32 %v340_v15, %v96_v11 }
 0x100   :  { %v301_v18 = vpop.f32.mrf.mxu0  ;;  %v342_v19 = vpop.f32.mrf.mxu1 }
 0x101   :  { %v349_v20 = vmax.f32 %v341_v17, 0.0  ;;  %v302_v21 = vadd.f32 %v301_v18, %v92_v12  ;;  %v343_v22 = vadd.f32 %v342_v19, %v100_v13  ;;  %v347_v23 = vmax.f32 %v300_v16, 0.0 }
 0x102   :  { %v303_v24 = vpop.f32.mrf.mxu0  ;;  %v344_v25 = vpop.f32.mrf.mxu1 }
 0x103   :  { %v348_v26 = vmax.f32 %v302_v21, 0.0  ;;  %v350_v27 = vmax.f32 %v343_v22, 0.0  ;;  %v353_v28 = vpack.c.bf16 %v349_v20, %v349_v20  ;;  %v351_v33 = vpack.c.bf16 %v347_v23, %v347_v23 }
 0x104   :  { %v304_v29 = vpop.f32.mrf.mxu0  ;;  %v345_v30 = vpop.f32.mrf.mxu1 }
 0x105   :  { %v352_v31 = vpack.c.bf16 %v348_v26, %v348_v26  ;;  %v354_v32 = vpack.c.bf16 %v350_v27, %v350_v27 }
 0x107   :  { %650 = vmatprep.mubr.bf16.mxu0 %v352_v31  ;;  %690 = vmatprep.mubr.bf16.mxu1 %v354_v32 }
 0x108   :  { %651 = vmatmul.mubr.bf16.vlgmr.msra.gmra.mxu0 %v351_v33  ;;  %691 = vmatmul.mubr.bf16.vlgmr.msra.gmra.mxu1 %v353_v28 }
 0x1c8   :  { %v786_v34 = vpop.f32.mrf.mxu0  ;;  %v808_v35 = vpop.f32.mrf.mxu1 }
 0x1ca   :  { %v787_v37 = vpop.f32.mrf.mxu0  ;;  %v809_v38 = vpop.f32.mrf.mxu1 }
 0x1cb   :  { %v788_v39 = vadd.f32 %v787_v37, %v786_v34  ;;  %v810_v43 = vadd.f32 %v809_v38, %v808_v35 }
 0x1cc   :  { %v789_v40 = vpop.f32.mrf.mxu0  ;;  %v811_v41 = vpop.f32.mrf.mxu1 }
 0x1cd   :  { %v653_v42 = vadd.f32 %v788_v39, %v737_v36 }
 0x1ce   :  { %v790_v44 = vpop.f32.mrf.mxu0  ;;  %v812_v45 = vpop.f32.mrf.mxu1 }
 0x1cf   :  { %v693_v46 = vadd.f32 %v810_v43, %v653_v42 }
 0x1d1   :  { %698 = vst [vmem:[%s1005_s5] sm:$0xf] %v693_v46 }
 0x1d2   :  { %703 = vsyncpa [#allocation3], 1 }
 0x1d3   :  { %704 = vsyncpa [#allocation5], 1 }

</bundles_post_ra>
